<compile_context>
chip_gen: v6e
topology: v6e:2x2x1
jax: 0.10.0
libtpu: 0.0.40
codegen_flags: <defaults>
</compile_context>

<pallas_src>
from functools import partial

import jax
import jax.numpy as jnp
from jax.experimental import pallas as pl
from jax.experimental.pallas import tpu as pltpu


# ----------------------------------------------------------------------------
# Kernel
# ----------------------------------------------------------------------------
def _mlp_kernel(x_ref, w12_ref, w3_ref, o_ref, acc_ref, *, ew_dtype):
    f = pl.program_id(1)

    @pl.when(f == 0)
    def _():
        acc_ref[...] = jnp.zeros_like(acc_ref)

    tf = w3_ref.shape[0]
    # Fused gate/up projection: one MXU matmul -> (tm, 2*tf), f32 accumulation.
    h = jnp.dot(x_ref[...], w12_ref[...], preferred_element_type=jnp.float32)
    h1 = h[:, :tf].astype(ew_dtype)          # x @ w1 tile
    h2 = h[:, tf:].astype(ew_dtype)          # x @ w2 tile
    # SiLU(h2) * h1 on the VPU/EUP (f32 on v5e/v6e, bf16 on v7x).
    g = (h2 * jax.nn.sigmoid(h2)) * h1
    # Partial down projection, accumulated over the F grid axis in f32.
    acc_ref[...] += jnp.dot(g.astype(w3_ref.dtype), w3_ref[...],
                            preferred_element_type=jnp.float32)

    @pl.when(f == pl.num_programs(1) - 1)
    def _():
        o_ref[...] = acc_ref[...].astype(o_ref.dtype)


# ----------------------------------------------------------------------------
# Helpers
# ----------------------------------------------------------------------------
def _round_up(a, b):
    return (a + b - 1) // b * b


def _device_vmem_capacity():
    """Physical per-core VMEM bytes; conservative 64 MiB fallback (v7x class)."""
    try:
        return int(pltpu.get_tpu_info().vmem_capacity_bytes)
    except Exception:
        return 64 << 20


def _vmem_need(tm, tf, D, in_bytes, out_bytes, ew_bytes):
    """Conservative VMEM footprint of one grid step (double-buffered blocks)."""
    x_blk = 2 * tm * D * in_bytes              # x tile
    w12_blk = 2 * D * (2 * tf) * in_bytes      # packed [w1|w2] tile
    w3_blk = 2 * tf * D * in_bytes             # w3 tile
    o_blk = 2 * tm * D * out_bytes             # output tile
    acc = tm * D * 4                           # f32 accumulator scratch
    inter = tm * 2 * tf * 4 + 3 * tm * 2 * tf * ew_bytes   # h + h1/h2/g
    return x_blk + w12_blk + w3_blk + o_blk + acc + inter


def pack_mlp_weights(w1_t, w2_t, w3_t, tf, *, compute_dtype=jnp.bfloat16):
    """Pre-pack weights (run once, outside the forward path).

    w1_t, w2_t: (D, F); w3_t: (F, D).  Returns block-contiguous
    (n_f, D, 2*tf) and (n_f, tf, D) arrays with F zero-padded to n_f*tf.
    """
    D, F = w1_t.shape
    F_pad = _round_up(F, tf)
    n_f = F_pad // tf
    w1c = w1_t.astype(compute_dtype)
    w2c = w2_t.astype(compute_dtype)
    w3c = w3_t.astype(compute_dtype)
    if F_pad != F:
        # silu(0) * 0 == 0 and zero w3 rows contribute nothing -> exact.
        w1c = jnp.pad(w1c, ((0, 0), (0, F_pad - F)))
        w2c = jnp.pad(w2c, ((0, 0), (0, F_pad - F)))
        w3c = jnp.pad(w3c, ((0, F_pad - F), (0, 0)))
    w1b = w1c.reshape(D, n_f, tf).transpose(1, 0, 2)     # (n_f, D, tf)
    w2b = w2c.reshape(D, n_f, tf).transpose(1, 0, 2)     # (n_f, D, tf)
    w12_blocks = jnp.concatenate([w1b, w2b], axis=2)     # (n_f, D, 2*tf)
    w3_blocks = w3c.reshape(n_f, tf, D)                  # (n_f, tf, D)
    return w12_blocks, w3_blocks


# ----------------------------------------------------------------------------
# pallas_call wrapper
# ----------------------------------------------------------------------------
def mlp_pallas(x, w12_blocks, w3_blocks, *, tm=512, ew_dtype=jnp.float32):
    """x: (B, T, D); w12_blocks: (n_f, D, 2*tf); w3_blocks: (n_f, tf, D)."""
    B, T, D = x.shape
    n_f, Dw, tf2 = w12_blocks.shape
    tf = tf2 // 2
    assert Dw == D and w3_blocks.shape == (n_f, tf, D)
    compute_dtype = w12_blocks.dtype
    M = B * T

    cap = _device_vmem_capacity()

    # Row tile: multiple of 128 (MXU rows), clamped to the padded row count.
    tm = max(128, _round_up(min(tm, _round_up(M, 128)), 128))
    M_pad = _round_up(M, tm)
    # On the 64-MiB / 2-TensorCore class (v7x), make sure both cores get rows.
    if cap < (100 << 20) and M_pad // tm < 2 and tm > 128:
        tm = max(128, _round_up(tm // 2, 128))
        M_pad = _round_up(M, tm)
    grid_m = M_pad // tm

    in_bytes = jnp.dtype(compute_dtype).itemsize
    out_bytes = jnp.dtype(x.dtype).itemsize
    ew_bytes = jnp.dtype(ew_dtype).itemsize

    x2d = x.reshape(M, D).astype(compute_dtype)
    if M_pad != M:
        x2d = jnp.pad(x2d, ((0, M_pad - M), (0, 0)))

    # VMEM limit: real footprint + headroom, clamped to physical capacity.
    need = _vmem_need(tm, tf, D, in_bytes, out_bytes, ew_bytes)
    vmem_limit = int(min(cap - (4 << 20), max(need + (8 << 20), 32 << 20)))

    F_pad = n_f * tf
    flops = 2 * M_pad * (2 * D * F_pad + F_pad * D)
    # Weights are re-streamed once per row tile.
    bytes_accessed = int(M_pad * D * in_bytes
                         + grid_m * (w12_blocks.size + w3_blocks.size) * in_bytes
                         + M_pad * D * out_bytes)

    out2d = pl.pallas_call(
        partial(_mlp_kernel, ew_dtype=ew_dtype),
        out_shape=jax.ShapeDtypeStruct((M_pad, D), x.dtype),
        grid_spec=pltpu.PrefetchScalarGridSpec(
            num_scalar_prefetch=0,
            grid=(grid_m, n_f),
            in_specs=[
                # x rows: block index depends only on i -> stays resident
                # across the whole f loop.
                pl.BlockSpec((tm, D), lambda i, f: (i, 0)),
                # Block-contiguous weight tiles (leading block axis squeezed).
                pl.BlockSpec((None, D, 2 * tf), lambda i, f: (f, 0, 0)),
                pl.BlockSpec((None, tf, D), lambda i, f: (f, 0, 0)),
            ],
            out_specs=pl.BlockSpec((tm, D), lambda i, f: (i, 0)),
            scratch_shapes=[pltpu.VMEM((tm, D), jnp.float32)],   # down-proj acc
        ),
        compiler_params=pltpu.CompilerParams(
            dimension_semantics=("parallel", "arbitrary"),
            vmem_limit_bytes=vmem_limit),
        cost_estimate=pl.CostEstimate(
            flops=int(flops), transcendentals=int(M_pad * F_pad),
            bytes_accessed=bytes_accessed),
    )(x2d, w12_blocks, w3_blocks)
    return out2d[:M].reshape(B, T, D)


def make_mlp(w1_t, w2_t, w3_t, *, compute_dtype=jnp.bfloat16,
             tf=None, tm=None, ew_dtype=None):
    """Select device-appropriate tiles, pack weights once, return forward fn."""
    D, F = w1_t.shape
    assert w2_t.shape == (D, F) and w3_t.shape == (F, D)
    cap = _device_vmem_capacity()
    big_vmem = cap >= (100 << 20)          # v5e/v6e: 128 MiB; v7x: 64 MiB

    if ew_dtype is None:
        # v5e has no bf16 VPU/EUP -> f32 on the 128-MiB class; bf16 on the
        # tight 64-MiB class (v7x) to free VMEM for larger row tiles.
        ew_dtype = jnp.float32 if big_vmem else jnp.bfloat16
    if tf is None:
        tf = min(1024 if big_vmem else 512, _round_up(F, 128))
    tf = max(128, _round_up(tf, 128))
    if tm is None:
        in_b = jnp.dtype(compute_dtype).itemsize
        ew_b = jnp.dtype(ew_dtype).itemsize
        budget = cap - (8 << 20)
        tm = 768 if big_vmem else 512       # target row reuse per weight fetch
        while tm > 128 and _vmem_need(tm, tf, D, in_b, 4, ew_b) > budget:
            tm -= 128

    # One-time pack/cast (kept out of the per-call forward path).
    w12_blocks, w3_blocks = pack_mlp_weights(w1_t, w2_t, w3_t, tf,
                                             compute_dtype=compute_dtype)

    def forward(x):
        return mlp_pallas(x, w12_blocks, w3_blocks, tm=tm, ew_dtype=ew_dtype)

    forward.tm, forward.tf, forward.ew_dtype = tm, tf, ew_dtype
    return forward


# ----------------------------------------------------------------------------
# Reference (precision-matched: bf16 matmuls, f32 accumulation)
# ----------------------------------------------------------------------------
def mlp_reference(x, w1_t, w2_t, w3_t, *, compute_dtype=jnp.bfloat16,
                  ew_dtype=jnp.float32):
    xb = x.astype(compute_dtype)
    h1 = jnp.dot(xb, w1_t.astype(compute_dtype),
                 preferred_element_type=jnp.float32).astype(ew_dtype)
    h2 = jnp.dot(xb, w2_t.astype(compute_dtype),
                 preferred_element_type=jnp.float32).astype(ew_dtype)
    g = (h2 * jax.nn.sigmoid(h2)) * h1
    out = jnp.dot(g.astype(compute_dtype), w3_t.astype(compute_dtype),
                  preferred_element_type=jnp.float32)
    return out.astype(x.dtype)


if __name__ == "__main__":
    # Small demo config (PinyConfig scaled down): n_embd=128, ffn_dim=320.
    B, T = 2, 8
    D = 128
    F = 320     # deliberately NOT a multiple of tf -> exercises F zero-padding

    key = jax.random.PRNGKey(0)
    kx, k1, k2, k3 = jax.random.split(key, 4)

    x = jax.random.normal(kx, (B, T, D), dtype=jnp.float32)
    # Weights stored already transposed to (in, out) layout for the kernel.
    w1_t = jax.random.normal(k1, (D, F), dtype=jnp.float32) / jnp.sqrt(D)
    w2_t = jax.random.normal(k2, (D, F), dtype=jnp.float32) / jnp.sqrt(D)
    w3_t = jax.random.normal(k3, (F, D), dtype=jnp.float32) / jnp.sqrt(F)

    # Force a small tf so the tiny demo still exercises the multi-tile F
    # accumulation path (n_f = 3) and the F padding (320 -> 384).
    mlp = make_mlp(w1_t, w2_t, w3_t, tf=128)
    out = jax.block_until_ready(mlp(x))

    ref = mlp_reference(x, w1_t, w2_t, w3_t, ew_dtype=mlp.ew_dtype)
    assert out.shape == (B, T, D)
    max_err = float(jnp.max(jnp.abs(out - ref)))
    assert jnp.allclose(out, ref, atol=1e-2, rtol=1e-2), \
        f"mismatch vs reference (max abs err {max_err})"

    print("KERNEL_OK")
</pallas_src>

<mosaic_0001>
module attributes {stable_mosaic.version = 11 : i64} {
  func.func @_mlp_kernel(%arg0: i32, %arg1: i32, %arg2: memref<128x128xbf16, #tpu.memory_space<vmem>>, %arg3: memref<1x128x256xbf16, #tpu.memory_space<vmem>>, %arg4: memref<1x128x128xbf16, #tpu.memory_space<vmem>>, %arg5: memref<128x128xf32, #tpu.memory_space<vmem>>, %arg6: memref<128x128xf32, #tpu.memory_space<vmem>>) attributes {dimension_semantics = [#tpu.dimension_semantics<parallel>, #tpu.dimension_semantics<arbitrary>], iteration_bounds = array<i64: 1, 3>, scalar_prefetch = 0 : i64, scratch_operands = 1 : i64, tpu.core_type = #tpu.core_type<tc>, window_params = [{transform_indices = @transform_0, window_bounds = array<i64: 128, 128>}, {transform_indices = @transform_1, window_bounds = array<i64: 1, 128, 256>}, {transform_indices = @transform_2, window_bounds = array<i64: 1, 128, 128>}, {transform_indices = @transform_3, window_bounds = array<i64: 128, 128>}]} {
    %c0_i32 = arith.constant 0 : i32
    %0 = arith.cmpi eq, %arg1, %c0_i32 : i32
    %1 = arith.extui %0 : i1 to i32
    %c0_i32_0 = arith.constant 0 : i32
    %2 = arith.cmpi ne, %1, %c0_i32_0 : i32
    scf.if %2 {
      %cst_15 = arith.constant 0.000000e+00 : f32
      %27 = vector.broadcast %cst_15 : f32 to vector<128x128xf32>
      %c0_16 = arith.constant 0 : index
      %c0_17 = arith.constant 0 : index
      %28 = vector.load %arg6[%c0_16, %c0_17] : memref<128x128xf32, #tpu.memory_space<vmem>>, vector<128x128xf32>
      tpu.vector_store %arg6[%c0_16, %c0_17], %27 {strides = array<i32>} : memref<128x128xf32, #tpu.memory_space<vmem>>, vector<128x128xf32>,
    } else {
    }
    %c0 = arith.constant 0 : index
    %c0_1 = arith.constant 0 : index
    %3 = vector.load %arg2[%c0, %c0_1] : memref<128x128xbf16, #tpu.memory_space<vmem>>, vector<128x128xbf16>
    %c0_2 = arith.constant 0 : index
    %c0_3 = arith.constant 0 : index
    %c0_4 = arith.constant 0 : index
    %4 = vector.load %arg3[%c0_2, %c0_3, %c0_4] : memref<1x128x256xbf16, #tpu.memory_space<vmem>>, vector<1x128x256xbf16>
    %5 = vector.shape_cast %4 : vector<1x128x256xbf16> to vector<128x256xbf16>
    %cst = arith.constant dense<0.000000e+00> : vector<128x256xf32>
    %6 = tpu.matmul %3, %5, %cst {dimension_numbers = #tpu.dot_dimension_numbers<[1], [0], [0], [1], [0, 0, 1, 1], [], []>} : vector<128x128xbf16>, vector<128x256xbf16>, vector<128x256xf32> -> vector<128x256xf32>
    %7 = vector.extract_strided_slice %6 {offsets = [0, 0], sizes = [128, 128], strides = [1, 1]} : vector<128x256xf32> to vector<128x128xf32>
    %8 = arith.truncf %7 : vector<128x128xf32> to vector<128x128xbf16>
    %9 = vector.extract_strided_slice %6 {offsets = [0, 128], sizes = [128, 128], strides = [1, 1]} : vector<128x256xf32> to vector<128x128xf32>
    %10 = arith.truncf %9 : vector<128x128xf32> to vector<128x128xbf16>
    %11 = arith.negf %10 : vector<128x128xbf16>
    %12 = math.exp %11 : vector<128x128xbf16>
    %cst_5 = arith.constant 1.000000e+00 : bf16
    %13 = vector.broadcast %cst_5 : bf16 to vector<128x128xbf16>
    %14 = arith.addf %13, %12 : vector<128x128xbf16>
    %15 = arith.divf %13, %14 : vector<128x128xbf16>
    %16 = arith.mulf %10, %15 : vector<128x128xbf16>
    %17 = arith.mulf %16, %8 : vector<128x128xbf16>
    %c0_6 = arith.constant 0 : index
    %c0_7 = arith.constant 0 : index
    %18 = vector.load %arg6[%c0_6, %c0_7] : memref<128x128xf32, #tpu.memory_space<vmem>>, vector<128x128xf32>
    %c0_8 = arith.constant 0 : index
    %c0_9 = arith.constant 0 : index
    %c0_10 = arith.constant 0 : index
    %19 = vector.load %arg4[%c0_8, %c0_9, %c0_10] : memref<1x128x128xbf16, #tpu.memory_space<vmem>>, vector<1x128x128xbf16>
    %20 = vector.shape_cast %19 : vector<1x128x128xbf16> to vector<128x128xbf16>
    %cst_11 = arith.constant dense<0.000000e+00> : vector<128x128xf32>
    %21 = tpu.matmul %17, %20, %cst_11 {dimension_numbers = #tpu.dot_dimension_numbers<[1], [0], [0], [1], [0, 0, 1, 1], [], []>} : vector<128x128xbf16>, vector<128x128xbf16>, vector<128x128xf32> -> vector<128x128xf32>
    %22 = arith.addf %18, %21 : vector<128x128xf32>
    %c0_12 = arith.constant 0 : index
    %c0_13 = arith.constant 0 : index
    %23 = vector.load %arg6[%c0_12, %c0_13] : memref<128x128xf32, #tpu.memory_space<vmem>>, vector<128x128xf32>
    tpu.vector_store %arg6[%c0_12, %c0_13], %22 {strides = array<i32>} : memref<128x128xf32, #tpu.memory_space<vmem>>, vector<128x128xf32>,
    %c2_i32 = arith.constant 2 : i32
    %24 = arith.cmpi eq, %arg1, %c2_i32 : i32
    %25 = arith.extui %24 : i1 to i32
    %c0_i32_14 = arith.constant 0 : i32
    %26 = arith.cmpi ne, %25, %c0_i32_14 : i32
    scf.if %26 {
      %c0_15 = arith.constant 0 : index
      %c0_16 = arith.constant 0 : index
      %27 = vector.load %arg6[%c0_15, %c0_16] : memref<128x128xf32, #tpu.memory_space<vmem>>, vector<128x128xf32>
      %c0_17 = arith.constant 0 : index
      %c0_18 = arith.constant 0 : index
      %28 = vector.load %arg5[%c0_17, %c0_18] : memref<128x128xf32, #tpu.memory_space<vmem>>, vector<128x128xf32>
      tpu.vector_store %arg5[%c0_17, %c0_18], %27 {strides = array<i32>} : memref<128x128xf32, #tpu.memory_space<vmem>>, vector<128x128xf32>,
    } else {
    }
    return
  }
  func.func @transform_0(%arg0: i32, %arg1: i32) -> (i32, i32) {
    %c0_i32 = arith.constant 0 : i32
    %c0_i32_0 = arith.constant 0 : i32
    return %arg0, %c0_i32 : i32, i32
  }
  func.func @transform_1(%arg0: i32, %arg1: i32) -> (i32, i32, i32) {
    %c0_i32 = arith.constant 0 : i32
    %c0_i32_0 = arith.constant 0 : i32
    %c0_i32_1 = arith.constant 0 : i32
    return %arg1, %c0_i32, %c0_i32_0 : i32, i32, i32
  }
  func.func @transform_2(%arg0: i32, %arg1: i32) -> (i32, i32, i32) {
    %c0_i32 = arith.constant 0 : i32
    %c0_i32_0 = arith.constant 0 : i32
    %c0_i32_1 = arith.constant 0 : i32
    return %arg1, %c0_i32, %c0_i32_0 : i32, i32, i32
  }
  func.func @transform_3(%arg0: i32, %arg1: i32) -> (i32, i32) {
    %c0_i32 = arith.constant 0 : i32
    %c0_i32_0 = arith.constant 0 : i32
    return %arg0, %c0_i32 : i32, i32
  }
}

</mosaic_0001>

<bundles_post_ra>
// kernel: tpu_custom_call.1
= control target key start
LH: loop header
LB: loop body
LE: loop exit
PB: predicated region body
PF: predicated region fallthrough
CT: control target
= control target key end

     0   :  { %8 = vsyncpa [#allocation4], 0  ;;  %s1684_s0 = inlined_call_operand.hbm [shape: bf16[128,128], index: 0, kind: input, shape index: {}]   ;;  %s1685_s1 = inlined_call_operand.hbm [shape: bf16[3,128,256], index: 1, kind: input, shape index: {}]   ;;  %s1686_s2 = inlined_call_operand.hbm [shape: bf16[3,128,128], index: 2, kind: input, shape index: {}]   ;;  %s1687_s3 = inlined_call_operand.hbm [shape: f32[128,128], index: 3, kind: output, shape index: {}]  }
   0x1   :  { %9 = vsyncpa [#allocation7], 0 }
   0x2   :  { %11 = vsyncpa [#allocation7 + $0x1], 0 }
   0x3   :  { %12 = vsyncpa [#allocation5], 0  ;;  %s1457_s12 = smov 0   ;;  %s1459_s13 = smov 0  }
   0x4   :  { %s1461_s14 = smov 0   ;;  %s1463_s15 = smov 0  }
   0x5   :  { %s1465_s16 = smov 0   ;;  %s1467_s17 = smov 0  }
   0x6 LB: > { %s27_s18 = sadd.s32 1, %s1419_s16  ;;  %s63_s19 = sadd.s32 1, %s1411_s14  ;;  %s1423_s17 = sphi %s1467_s17, %s18_s17   ;;  %s1419_s16 = sphi %s1465_s16, %s1696_s16   ;;  %s1415_s15 = sphi %s1463_s15, %s1695_s15   ;;  %s1411_s14 = sphi %s1461_s14, %s1694_s14   ;;  %s1407_s13 = sphi %s1459_s13, %s1693_s13   ;;  %s1403_s12 = sphi %s1457_s12, %s1692_s12  }
   0x7   : > { %p28_p0 = scmp.ge.s32.totalorder %s27_s18, 3  ;;  %p70_p1 = scmp.ne.s32.totalorder %s1411_s14, %s1407_s13 }
   0x8   : > { %p71_p2 = scmp.eq.s32.totalorder %s1423_s17, 0  ;;  %p1125_p4 = scmp.lt.s32.totalorder %s1423_s17, 3 }
   0x9   : > { %s1698_s18 = smov (%p28_p0, %s27_s18), 0  ;;  %s168_s21 = sand.u32 1, %s1423_s17  }
   0xa   : > { %p72_p3 = por %p71_p2, %p70_p1  ;;  %s60_s20 = ssub.s32 %s1419_s16, %s1698_s18 }
   0xb   : > { %p61_p5 = scmp.eq.s32.totalorder %s60_s20, 0  ;;  %s170_s22 = sand.u32 1, %s1411_s14  }
   0xc   : > { %s1051_s23 = sshll.u32 %s1419_s16, 11  ;;  %s995_s25 = sshll.u32 %s170_s22, 7 }
   0xd   : > { %s1501_s24 = scalar_select %p61_p5, %s1411_s14, %s63_s19  }
   0xe   : > { %s178_s28 = scalar_lea.hbm %s1685_s1, %s1051_s23  ;;  %p1506_p6 = pnand %p1125_p4, %p72_p3 }
   0xf   : > { %s172_s30 = scalar_lea.vmem [#allocation6], %s995_s25  ;;  %s998_s5 = sshll.u32 %s170_s22, 6 }
  0x10   : > { %s179_s4 = sshll.u32 %s172_s30, 4  ;;  %s1510_s6 = scalar_lea.sflag [#allocation7], %s168_s21  ;;  %s180_s4 = int_to_ptr.vmem [resolvable:$true] %s179_s4 }
  0x11   : > { %p1261_p7 = pneg %p1506_p6  ;;  %s1272_s7 = scalar_lea.vmem %s180_s4, 2048 }
  0x12   : > { %p1273_p8 = scmp.ne.s32.totalorder %s180_s4, %s1272_s7  ;;  %s1425_s8 = smov [#allocation6]  }
  0x13   : > { %s1277_s9 = sshll.u32 %s1425_s8, 4  ;;  %s1278_s9 = int_to_ptr.vmem [resolvable:$false] %s1277_s9 }
  0x14   : > { %p1275_p9 = pnand %p1273_p8, %p1261_p7  ;;  %s1279_s10 = scalar_lea.vmem %s1278_s9, 4096 }
  0x15   : > { %p1280_p11 = scmp.lt.s32.totalorder %s180_s4, %s1278_s9  ;;  %p1281_p12 = scmp.lt.s32.totalorder %s1279_s10, %s1272_s7 }
  0x16   : > { %p1276_p10 = pneg %p1275_p9 }
  0x17   : > { %p1282_p13 = por %p1281_p12, %p1280_p11 }
  0x19   : > { %p1283_p0 = pnand %p1282_p13, %p1276_p10 }
  0x1b   : > { %1286 = shalt.err (!%p1283_p0)
}
  0x1c   : > { %s1426_s11 = smov 128   ;;  %s1427_s19 = smov 8  }
  0x1d   : > { %1120 = dma.hbm_to_vmem [thread:$0]  (!%p1506_p6), %s178_s28, 2048, %s180_s4, %s1510_s6, %s1426_s11, %s1426_s11, %s1427_s19  }
  0x1e   : > { %s193_s20 = scalar_lea.vmem [#allocation8], %s998_s5  ;;  %s1521_s22 = sadd.s32 4294967295, %s1423_s17  }
  0x1f   : > { %s200_s21 = sshll.u32 %s193_s20, 4  ;;  %p76_p1 = scmp.ne.s32.totalorder %s1407_s13, %s1403_s12  ;;  %s201_s21 = int_to_ptr.vmem [resolvable:$true] %s200_s21 }
  0x20   : > { %p77_p2 = scmp.eq.s32.totalorder %s1521_s22, 0  ;;  %p992_p3 = scmp.ge.s32.totalorder %s1423_s17, 1 }
  0x21   : > { %p139_p4 = scmp.lt.s32.totalorder %s1423_s17, 4  ;;  %s1428_s26 = smov [#allocation3]  }
  0x22   : > { %p1530_p5 = por %p77_p2, %p76_p1  ;;  %s154_s27 = sshll.u32 %s1428_s26, 4  ;;  %s1538_s27 = int_to_ptr.vmem [resolvable:$true] %s154_s27 }
  0x23   : > { %p1534_p8 = pnand %p992_p3, %p139_p4  ;;  %s1052_s12 = sshll.u32 %s1419_s16, 10 }
  0x24   : > { %s199_s5 = scalar_lea.hbm %s1686_s2, %s1052_s12  ;;  %s1300_s7 = scalar_lea.vmem %s201_s21, 1024 }
  0x25   : > { %p1113_p9 = pneg %p1534_p8  ;;  %p1301_p11 = scmp.ne.s32.totalorder %s201_s21, %s1300_s7 }
  0x26   : > { %s1429_s8 = smov [#allocation8]  }
  0x27   : > { %p1545_p10 = pnand %p1113_p9, %p77_p2  ;;  %p1303_p12 = pnand %p1301_p11, %p1261_p7 }
  0x28   : > { %s1305_s9 = sshll.u32 %s1429_s8, 4  ;;  %s1306_s9 = int_to_ptr.vmem [resolvable:$false] %s1305_s9 }
  0x29   : > { %p1304_p13 = pneg %p1303_p12  ;;  %s1307_s10 = scalar_lea.vmem %s1306_s9, 2048 }
  0x2a   : > { %p1308_p0 = scmp.lt.s32.totalorder %s201_s21, %s1306_s9  ;;  %p1309_p1 = scmp.lt.s32.totalorder %s1307_s10, %s1300_s7 }
  0x2c   : > { %p1310_p3 = por %p1309_p1, %p1308_p0 }
  0x2e   : > { %p1311_p4 = pnand %p1310_p3, %p1304_p13 }
  0x30   : > { %1314 = shalt.err (!%p1311_p4)
}
  0x31   : > { %s1430_s11 = smov 64   ;;  %s1431_s19 = smov 4  }
  0x32   : > { %1123 = dma.hbm_to_vmem [thread:$0]  (!%p1506_p6), %s199_s5, 1024, %s201_s21, %s1510_s6, %s1430_s11, %s1430_s11, %s1431_s19  }
  0x33   : > { %p1317_p7 = pneg %p1545_p10  ;;  %s1326_s20 = scalar_lea.vmem %s1538_s27, 1024 }
  0x34   : > { %p1327_p9 = scmp.ne.s32.totalorder %s1538_s27, %s1326_s20  ;;  %p1334_p0 = scmp.lt.s32.totalorder %s1538_s27, %s1538_s27 }
  0x35   : > { %p1335_p13 = scmp.lt.s32.totalorder %s1326_s20, %s1326_s20 }
  0x36   : > { %p1329_p11 = pnand %p1327_p9, %p1317_p7 }
  0x37   : > { %p1336_p1 = por %p1335_p13, %p1334_p0 }
  0x38   : > { %p1330_p12 = pneg %p1329_p11 }
  0x3a   : > { %p1337_p3 = pnand %p1336_p1, %p1330_p12 }
  0x3c   : > { %1340 = shalt.err (!%p1337_p3)
}
  0x3d   : > { %1116 = dma.hbm_to_vmem [thread:$0]  (!%p1545_p10), %s1684_s0, 1024, %s1538_s27, [#allocation4], %s1430_s11, %s1430_s11, %s1431_s19  }
  0x3e   : > { %212 = sbr.rel (%p1534_p8) target bundleno = 645 (0x285), region = 32 }
  0x43   : > { %1390 = dma.done.wait (%p77_p2), [#allocation4], 1024  }
  0x44   : > { %1392 = vsyncadd (%p77_p2), [#allocation4], 4294966272  ;;  %s218_s29 = sand.u32 1, %s1521_s22   ;;  %s220_s6 = sand.u32 1, %s1407_s13  }
  0x45   : > { %s1003_s21 = sshll.u32 %s220_s6, 7  ;;  %s219_s28 = scalar_lea.sflag [#allocation7], %s218_s29 }
  0x46   : > { %s1578_s30 = scalar_lea.vmem [#allocation6], %s1003_s21 }
  0x47   : > { %1394 = dma.done.wait (%p1530_p5), %s219_s28, 3072  }
  0x48   : > { %1396 = vsyncadd (%p1530_p5), %s219_s28, 4294964224  ;;  %s1004_s25 = sshll.u32 %s220_s6, 6  ;;  %p1005_p6 = scmp.ne.s32.totalorder %s1415_s15, 0 }
  0x49   : > { %s1584_s27 = scalar_lea.vmem [#allocation8], %s1004_s25 }
  0x4a   : > { %261 = sbr.rel (%p1005_p6) target bundleno = 88 (0x58), region = 48 }
  0x4f   : > { %v1432_v0 = vmov 0.0  }
  0x50   : > { %262 = vst [vmem:[#allocation2 + $0x30] sm:$0xff] %v1432_v0  ;;  %263 = vst [vmem:[#allocation2] sm:$0xff] %v1432_v0 }
  0x51   : > { %264 = vst [vmem:[#allocation2 + $0x58] sm:$0xff] %v1432_v0  ;;  %265 = vst [vmem:[#allocation2 + $0x18] sm:$0xff] %v1432_v0 }
  0x52   : > { %266 = vst [vmem:[#allocation2 + $0x50] sm:$0xff] %v1432_v0  ;;  %267 = vst [vmem:[#allocation2 + $0x68] sm:$0xff] %v1432_v0 }
  0x53   : > { %268 = vst [vmem:[#allocation2 + $0x8] sm:$0xff] %v1432_v0  ;;  %269 = vst [vmem:[#allocation2 + $0x48] sm:$0xff] %v1432_v0 }
  0x54   : > { %270 = vst [vmem:[#allocation2 + $0x40] sm:$0xff] %v1432_v0  ;;  %271 = vst [vmem:[#allocation2 + $0x20] sm:$0xff] %v1432_v0 }
  0x55   : > { %272 = vst [vmem:[#allocation2 + $0x10] sm:$0xff] %v1432_v0  ;;  %273 = vst [vmem:[#allocation2 + $0x38] sm:$0xff] %v1432_v0 }
  0x56   : > { %274 = vst [vmem:[#allocation2 + $0x60] sm:$0xff] %v1432_v0  ;;  %275 = vst [vmem:[#allocation2 + $0x70] sm:$0xff] %v1432_v0 }
  0x57   : > { %276 = vst [vmem:[#allocation2 + $0x78] sm:$0xff] %v1432_v0  ;;  %277 = vst [vmem:[#allocation2 + $0x28] sm:$0xff] %v1432_v0 }
  0x58 PF: > { %v1187_v1 = vld [vmem:[%s1578_s30 + $0x74] ss:$8 sps:$4 sm:$0xff]   ;;  %v1189_v2 = vld [vmem:[%s1578_s30 + $0x70] ss:$8 sps:$4 sm:$0xff]   ;;  %v1433_v3 = vmov 0   ;;  %v1211_v18 = vld [vmem:[#allocation3] sm:$0xff]  }
  0x59   : > { %470 = vmatprep.mubr.bf16.mxu0 %v1433_v3  ;;  %438 = vmatprep.subr.bf16.mxu0 %v1187_v1  ;;  %v1190_v4 = vld [vmem:[%s1578_s30 + $0x64] ss:$8 sps:$4 sm:$0xff]   ;;  %v1192_v5 = vld [vmem:[%s1578_s30 + $0x60] ss:$8 sps:$4 sm:$0xff]   ;;  %v1193_v6 = vld [vmem:[%s1578_s30 + $0x54] ss:$8 sps:$4 sm:$0xff]  }
  0x5a   : > { %439 = vmatpush1.bf16.msra.mxu0 %v1189_v2  ;;  %v1195_v7 = vld [vmem:[%s1578_s30 + $0x50] ss:$8 sps:$4 sm:$0xff]   ;;  %v1196_v8 = vld [vmem:[%s1578_s30 + $0x44] ss:$8 sps:$4 sm:$0xff]   ;;  %v1198_v9 = vld [vmem:[%s1578_s30 + $0x40] ss:$8 sps:$4 sm:$0xff]  }
  0x5b   : > { %440 = vmatprep.subr.bf16.mxu0 %v1190_v4  ;;  %v1199_v10 = vld [vmem:[%s1578_s30 + $0x34] ss:$8 sps:$4 sm:$0xff]   ;;  %v1201_v11 = vld [vmem:[%s1578_s30 + $0x30] ss:$8 sps:$4 sm:$0xff]   ;;  %v1202_v12 = vld [vmem:[%s1578_s30 + $0x24] ss:$8 sps:$4 sm:$0xff]  }
  0x5c   : > { %v1204_v13 = vld [vmem:[%s1578_s30 + $0x20] ss:$8 sps:$4 sm:$0xff]   ;;  %v1205_v14 = vld [vmem:[%s1578_s30 + $0x14] ss:$8 sps:$4 sm:$0xff]   ;;  %v1207_v15 = vld [vmem:[%s1578_s30 + $0x10] ss:$8 sps:$4 sm:$0xff]  }
  0x5d   : > { %v1208_v16 = vld [vmem:[%s1578_s30 + $0x4] ss:$8 sps:$4 sm:$0xff]   ;;  %v1210_v17 = vld [vmem:[%s1578_s30] ss:$8 sps:$4 sm:$0xff]   ;;  %v1213_v20 = vld [vmem:[#allocation3 + $0x10] sm:$0xff]   ;;  %p1046_p2 = scmp.ne.s32.totalorder %s1415_s15, 2 }
  0x5e   : > { %441 = vmatpush1.bf16.msra.mxu0 %v1192_v5  ;;  %v1212_v19 = vld [vmem:[#allocation3 + $0x8] sm:$0xff]   ;;  %v1214_v21 = vld [vmem:[#allocation3 + $0x18] sm:$0xff]   ;;  %v1215_v22 = vld [vmem:[#allocation3 + $0x20] sm:$0xff]  }
  0x5f   : > { %442 = vmatprep.subr.bf16.mxu0 %v1193_v6  ;;  %v1216_v23 = vld [vmem:[#allocation3 + $0x28] sm:$0xff]   ;;  %v1217_v24 = vld [vmem:[#allocation3 + $0x30] sm:$0xff]   ;;  %v1218_v25 = vld [vmem:[#allocation3 + $0x38] sm:$0xff]  }
  0x60   : > { %v1219_v26 = vld [vmem:[%s1584_s27 + $0x38] sm:$0xff]   ;;  %v1220_v27 = vld [vmem:[%s1584_s27 + $0x30] sm:$0xff]   ;;  %v1221_v28 = vld [vmem:[%s1584_s27 + $0x28] sm:$0xff]  }
  0x61   : > { %1069 = vmatprep.subr.bf16.mxu1 %v1219_v26  ;;  %v1222_v29 = vld [vmem:[%s1584_s27 + $0x20] sm:$0xff]   ;;  %v1223_v30 = vld [vmem:[%s1584_s27 + $0x18] sm:$0xff]   ;;  %v1224_v31 = vld [vmem:[%s1584_s27 + $0x10] sm:$0xff]  }
  0x62   : > { %443 = vmatpush1.bf16.msra.mxu0 %v1195_v7  ;;  %1070 = vmatpush3.bf16.msra.mxu1 %v1219_v26  ;;  %v1225_v32 = vld [vmem:[%s1584_s27 + $0x8] sm:$0xff]   ;;  %v1226_v33 = vld [vmem:[%s1584_s27] sm:$0xff]  }
  0x63   : > { %444 = vmatprep.subr.bf16.mxu0 %v1196_v8  ;;  %1071 = vmatprep.subr.bf16.mxu1 %v1220_v27 }
  0x66   : > { %445 = vmatpush1.bf16.msra.mxu0 %v1198_v9  ;;  %1072 = vmatpush3.bf16.msra.mxu1 %v1220_v27 }
  0x67   : > { %446 = vmatprep.subr.bf16.mxu0 %v1199_v10  ;;  %1073 = vmatprep.subr.bf16.mxu1 %v1221_v28 }
  0x6a   : > { %447 = vmatpush1.bf16.msra.mxu0 %v1201_v11  ;;  %1074 = vmatpush3.bf16.msra.mxu1 %v1221_v28 }
  0x6b   : > { %448 = vmatprep.subr.bf16.mxu0 %v1202_v12  ;;  %1075 = vmatprep.subr.bf16.mxu1 %v1222_v29 }
  0x6e   : > { %449 = vmatpush1.bf16.msra.mxu0 %v1204_v13  ;;  %1076 = vmatpush3.bf16.msra.mxu1 %v1222_v29 }
  0x6f   : > { %450 = vmatprep.subr.bf16.mxu0 %v1205_v14  ;;  %1077 = vmatprep.subr.bf16.mxu1 %v1223_v30 }
  0x72   : > { %451 = vmatpush1.bf16.msra.mxu0 %v1207_v15  ;;  %1078 = vmatpush3.bf16.msra.mxu1 %v1223_v30 }
  0x73   : > { %452 = vmatprep.subr.bf16.mxu0 %v1208_v16  ;;  %1079 = vmatprep.subr.bf16.mxu1 %v1224_v31 }
  0x76   : > { %453 = vmatpush1.bf16.msra.mxu0 %v1210_v17  ;;  %1080 = vmatpush3.bf16.msra.mxu1 %v1224_v31 }
  0x77   : > { %1081 = vmatprep.subr.bf16.mxu1 %v1225_v32 }
  0x79   : > { %471 = vmatmul.mubr.bf16.vlgmr.msra.gmra.mxu0 %v1211_v18 }
  0x7a   : > { %480 = vmatprep.mubr.bf16.mxu0 %v1433_v3  ;;  %1082 = vmatpush3.bf16.msra.mxu1 %v1225_v32 }
  0x7b   : > { %1083 = vmatprep.subr.bf16.mxu1 %v1226_v33 }
  0x7e   : > { %1084 = vmatpush3.bf16.msra.mxu1 %v1226_v33 }
  0x81   : > { %481 = vmatmul.mubr.bf16.gmra.mxu0 %v1212_v19 }
  0x82   : > { %490 = vmatprep.mubr.bf16.mxu0 %v1433_v3 }
  0x89   : > { %491 = vmatmul.mubr.bf16.gmra.mxu0 %v1213_v20 }
  0x8a   : > { %500 = vmatprep.mubr.bf16.mxu0 %v1433_v3 }
  0x91   : > { %501 = vmatmul.mubr.bf16.gmra.mxu0 %v1214_v21 }
  0x92   : > { %510 = vmatprep.mubr.bf16.mxu0 %v1433_v3 }
  0x99   : > { %511 = vmatmul.mubr.bf16.gmra.mxu0 %v1215_v22 }
  0x9a   : > { %520 = vmatprep.mubr.bf16.mxu0 %v1433_v3 }
  0xa1   : > { %521 = vmatmul.mubr.bf16.gmra.mxu0 %v1216_v23 }
  0xa2   : > { %530 = vmatprep.mubr.bf16.mxu0 %v1433_v3 }
  0xa9   : > { %531 = vmatmul.mubr.bf16.gmra.mxu0 %v1217_v24 }
  0xaa   : > { %540 = vmatprep.mubr.bf16.mxu0 %v1433_v3 }
  0xb1   : > { %541 = vmatmul.mubr.bf16.gmra.mxu0 %v1218_v25 }
 0x139   : > { %v472_v34 = vpop.f32.mrf.mxu0 }
 0x13b   : > { %v474_v35 = vpop.f32.mrf.mxu0 }
 0x13d   : > { %v476_v36 = vpop.f32.mrf.mxu0 }
 0x13e   : > { %v551_v11 = vpack.c.bf16 %v476_v36, %v472_v34 }
 0x13f   : > { %v478_v37 = vpop.f32.mrf.mxu0 }
 0x140   : > { %v559_v38 = vpack.c.bf16 %v478_v37, %v474_v35 }
 0x141   : > { %v1611_v39 = vpop.f32.mrf.mxu0 }
 0x142   : > { %v1030_v40 = vmul.bf16 3216621497, %v559_v38 }
 0x143   : > { %v484_v41 = vpop.f32.mrf.mxu0 }
 0x144   : > { %1227 = vpow.bf16 %v1030_v40 }
 0x145   : > { %v486_v42 = vpop.f32.mrf.mxu0 }
 0x146   : > { %v552_v24 = vpack.c.bf16 %v486_v42, %v1611_v39 }
 0x147   : > { %v488_v43 = vpop.f32.mrf.mxu0 }
 0x148   : > { %v560_v44 = vpack.c.bf16 %v488_v43, %v484_v41 }
 0x149   : > { %v1613_v45 = vpop.f32.mrf.mxu0 }
 0x14a   : > { %v1031_v46 = vmul.bf16 3216621497, %v560_v44 }
 0x14b   : > { %v494_v47 = vpop.f32.mrf.mxu0 }
 0x14c   : > { %1229 = vpow.bf16 %v1031_v46 }
 0x14d   : > { %v1615_v48 = vpop.f32.mrf.mxu0 }
 0x14e   : > { %v553_v37 = vpack.c.bf16 %v1615_v48, %v1613_v45 }
 0x14f   : > { %v498_v49 = vpop.f32.mrf.mxu0 }
 0x150   : > { %v1617_v50 = vpack.c.bf16 %v498_v49, %v494_v47 }
 0x151   : > { %v1619_v51 = vpop.f32.mrf.mxu0 }
 0x152   : > { %v1228_v52 = vpop.eup %1227  ;;  %v1032_v53 = vmul.bf16 3216621497, %v1617_v50 }
 0x153   : > { %v599_v54 = vadd.bf16 1065369472, %v1228_v52  ;;  %v504_v55 = vpop.f32.mrf.mxu0 }
 0x154   : > { %1231 = vpow.bf16 %v1032_v53 }
 0x155   : > { %1233 = vrcp.bf16 %v599_v54  ;;  %v1622_v56 = vpop.f32.mrf.mxu0 }
 0x156   : > { %v554_v49 = vpack.c.bf16 %v1622_v56, %v1619_v51 }
 0x157   : > { %v508_v57 = vpop.f32.mrf.mxu0 }
 0x158   : > { %v1624_v58 = vpack.c.bf16 %v508_v57, %v504_v55 }
 0x159   : > { %v1626_v59 = vpop.f32.mrf.mxu0 }
 0x15a   : > { %v1230_v60 = vpop.eup %1229  ;;  %v1033_v61 = vmul.bf16 3216621497, %v1624_v58 }
 0x15b   : > { %v600_v62 = vadd.bf16 1065369472, %v1230_v60  ;;  %v514_v63 = vpop.f32.mrf.mxu0 }
 0x15c   : > { %1235 = vpow.bf16 %v1033_v61 }
 0x15d   : > { %1237 = vrcp.bf16 %v600_v62  ;;  %v1629_v0 = vpop.f32.mrf.mxu0 }
 0x15e   : > { %v555_v55 = vpack.c.bf16 %v1629_v0, %v1626_v59 }
 0x15f   : > { %v518_v1 = vpop.f32.mrf.mxu0 }
 0x160   : > { %v1631_v2 = vpack.c.bf16 %v518_v1, %v514_v63 }
 0x161   : > { %v1633_v3 = vpop.f32.mrf.mxu0 }
 0x162   : > { %v1232_v4 = vpop.eup %1231  ;;  %v1034_v5 = vmul.bf16 3216621497, %v1631_v2 }
 0x163   : > { %v1234_v6 = vpop.eup %1233  ;;  %v601_v7 = vadd.bf16 1065369472, %v1232_v4  ;;  %v524_v8 = vpop.f32.mrf.mxu0 }
 0x164   : > { %1239 = vpow.bf16 %v1034_v5  ;;  %v608_v9 = vmul.bf16 1065369472, %v1234_v6 }
 0x165   : > { %1241 = vrcp.bf16 %v601_v7  ;;  %v1636_v10 = vpop.f32.mrf.mxu0 }
 0x166   : > { %v623_v12 = vmul.bf16 %v608_v9, %v559_v38  ;;  %v556_v56 = vpack.c.bf16 %v1636_v10, %v1633_v3 }
 0x167   : > { %v528_v13 = vpop.f32.mrf.mxu0 }
 0x168   : > { %v564_v14 = vpack.c.bf16 %v528_v13, %v524_v8  ;;  %v631_v15 = vmul.bf16 %v623_v12, %v551_v11  ;;  %v641_v12 = vld [vmem:[#allocation2 + $0x58] sm:$0xff] }
 0x169   : > { %v1638_v16 = vpop.f32.mrf.mxu0 }
 0x16a   : > { %v1236_v17 = vpop.eup %1235  ;;  %v1035_v18 = vmul.bf16 3216621497, %v564_v14  ;;  %1085 = vmatprep.mubr.bf16.mxu1 %v631_v15  ;;  %v639_v15 = vld [vmem:[#allocation2 + $0x30] sm:$0xff] }
 0x16b   : > { %v1238_v19 = vpop.eup %1237  ;;  %v602_v20 = vadd.bf16 1065369472, %v1236_v17  ;;  %v534_v21 = vpop.f32.mrf.mxu0 }
 0x16c   : > { %v610_v22 = vmul.bf16 1065369472, %v1238_v19  ;;  %1243 = vpow.bf16 %v1035_v18  ;;  %v640_v19 = vld [vmem:[#allocation2] sm:$0xff] }
 0x16d   : > { %1245 = vrcp.bf16 %v602_v20  ;;  %v536_v23 = vpop.f32.mrf.mxu0 }
 0x16e   : > { %v624_v25 = vmul.bf16 %v610_v22, %v560_v44  ;;  %v557_v6 = vpack.c.bf16 %v536_v23, %v1638_v16  ;;  %v645_v22 = vld [vmem:[#allocation2 + $0x8] sm:$0xff] }
 0x16f   : > { %v538_v26 = vpop.f32.mrf.mxu0 }
 0x170   : > { %v565_v27 = vpack.c.bf16 %v538_v26, %v534_v21  ;;  %v632_v28 = vmul.bf16 %v624_v25, %v552_v24  ;;  %v643_v24 = vld [vmem:[#allocation2 + $0x50] sm:$0xff] }
 0x171   : > { %v542_v29 = vpop.f32.mrf.mxu0 }
 0x172   : > { %v1240_v30 = vpop.eup %1239  ;;  %v1036_v31 = vmul.bf16 3216621497, %v565_v27  ;;  %1086 = vmatmul.mubr.bf16.vlgmr.msra.gmra.mxu1 %v632_v28 }
 0x173   : > { %v1242_v32 = vpop.eup %1241  ;;  %v603_v33 = vadd.bf16 1065369472, %v1240_v30  ;;  %v544_v34 = vpop.f32.mrf.mxu0  ;;  %v644_v30 = vld [vmem:[#allocation2 + $0x68] sm:$0xff] }
 0x174   : > { %v612_v35 = vmul.bf16 1065369472, %v1242_v32  ;;  %1247 = vpow.bf16 %v1036_v31 }
 0x175   : > { %1249 = vrcp.bf16 %v603_v33  ;;  %v546_v36 = vpop.f32.mrf.mxu0 }
 0x176   : > { %v625_v38 = vmul.bf16 %v612_v35, %v1617_v50  ;;  %v558_v8 = vpack.c.bf16 %v546_v36, %v542_v29  ;;  %v647_v36 = vld [vmem:[#allocation2 + $0x40] sm:$0xff] }
 0x177   : > { %v548_v39 = vpop.f32.mrf.mxu0 }
 0x178   : > { %v566_v40 = vpack.c.bf16 %v548_v39, %v544_v34  ;;  %v633_v41 = vmul.bf16 %v625_v38, %v553_v37  ;;  %v649_v34 = vld [vmem:[#allocation2 + $0x10] sm:$0xff]  ;;  %v650_v39 = vld [vmem:[#allocation2 + $0x38] sm:$0xff] }
 0x17a   : > { %v1244_v42 = vpop.eup %1243  ;;  %v1037_v43 = vmul.bf16 3216621497, %v566_v40  ;;  %1089 = vmatprep.mubr.bf16.mxu1 %v633_v41 }
 0x17b   : > { %v1246_v44 = vpop.eup %1245  ;;  %v604_v46 = vadd.bf16 1065369472, %v1244_v42  ;;  %v648_v42 = vld [vmem:[#allocation2 + $0x20] sm:$0xff] }
 0x17c   : > { %v614_v47 = vmul.bf16 1065369472, %v1246_v44  ;;  %1251 = vpow.bf16 %v1037_v43 }
 0x17d   : > { %1253 = vrcp.bf16 %v604_v46 }
 0x17e   : > { %v626_v52 = vmul.bf16 %v614_v47, %v1624_v58  ;;  %v653_v47 = vld [vmem:[#allocation2 + $0x78] sm:$0xff] }
 0x180   : > { %v634_v53 = vmul.bf16 %v626_v52, %v554_v49  ;;  %v651_v52 = vld [vmem:[#allocation2 + $0x60] sm:$0xff] }
 0x182   : > { %v1248_v45 = vpop.eup %1247  ;;  %1090 = vmatmul.mubr.bf16.gmra.mxu1 %v634_v53 }
 0x183   : > { %v1250_v48 = vpop.eup %1249  ;;  %v605_v50 = vadd.bf16 1065369472, %v1248_v45 }
 0x184   : > { %v616_v54 = vmul.bf16 1065369472, %v1250_v48  ;;  %v654_v48 = vld [vmem:[#allocation2 + $0x28] sm:$0xff] }
 0x185   : > { %1255 = vrcp.bf16 %v605_v50 }
 0x186   : > { %v627_v57 = vmul.bf16 %v616_v54, %v1631_v2 }
 0x188   : > { %v635_v60 = vmul.bf16 %v627_v57, %v555_v55  ;;  %v652_v55 = vld [vmem:[#allocation2 + $0x70] sm:$0xff] }
 0x18a   : > { %v1252_v61 = vpop.eup %1251  ;;  %1093 = vmatprep.mubr.bf16.mxu1 %v635_v60 }
 0x18b   : > { %v1254_v62 = vpop.eup %1253  ;;  %v606_v63 = vadd.bf16 1065369472, %v1252_v61 }
 0x18c   : > { %v618_v51 = vmul.bf16 1065369472, %v1254_v62 }
 0x18d   : > { %1257 = vrcp.bf16 %v606_v63 }
 0x18e   : > { %v628_v58 = vmul.bf16 %v618_v51, %v564_v14  ;;  %v642_v14 = vld [vmem:[#allocation2 + $0x18] sm:$0xff] }
 0x190   : > { %v636_v1 = vmul.bf16 %v628_v58, %v556_v56 }
 0x192   : > { %1094 = vmatmul.mubr.bf16.gmra.mxu1 %v636_v1 }
 0x193   : > { %v1256_v4 = vpop.eup %1255 }
 0x194   : > { %v620_v5 = vmul.bf16 1065369472, %v1256_v4 }
 0x196   : > { %v629_v59 = vmul.bf16 %v620_v5, %v565_v27  ;;  %v646_v27 = vld [vmem:[#allocation2 + $0x48] sm:$0xff] }
 0x198   : > { %v637_v0 = vmul.bf16 %v629_v59, %v557_v6 }
 0x19a   : > { %1097 = vmatprep.mubr.bf16.mxu1 %v637_v0 }
 0x19b   : > { %v1258_v2 = vpop.eup %1257 }
 0x19c   : > { %v622_v7 = vmul.bf16 1065369472, %v1258_v2 }
 0x19e   : > { %v630_v9 = vmul.bf16 %v622_v7, %v566_v40 }
 0x1a0   : > { %v638_v11 = vmul.bf16 %v630_v9, %v558_v8 }
 0x1a2   : > { %1098 = vmatmul.mubr.bf16.gmra.mxu1 %v638_v11 }
 0x232   : > { %v1087_v13 = vpop.f32.mrf.mxu1 }
 0x233   : > { %v818_v3 = vadd.f32 %v1087_v13, %v641_v12 }
 0x234   : > { %v753_v10 = vpop.f32.mrf.mxu1 }
 0x235   : > { %834 = vst [vmem:[#allocation2 + $0x58] sm:$0xff] %v818_v3  ;;  %v816_v17 = vadd.f32 %v753_v10, %v639_v15 }
 0x236   : > { %v1088_v18 = vpop.f32.mrf.mxu1 }
 0x237   : > { %832 = vst [vmem:[#allocation2 + $0x30] sm:$0xff] %v816_v17  ;;  %v819_v16 = vadd.f32 %v1088_v18, %v642_v14 }
 0x238   : > { %v756_v20 = vpop.f32.mrf.mxu1 }
 0x239   : > { %835 = vst [vmem:[#allocation2 + $0x18] sm:$0xff] %v819_v16  ;;  %v817_v21 = vadd.f32 %v756_v20, %v640_v19 }
 0x23b   : > { %833 = vst [vmem:[#allocation2] sm:$0xff] %v817_v21 }
 0x242   : > { %v1091_v23 = vpop.f32.mrf.mxu1 }
 0x243   : > { %v822_v25 = vadd.f32 %v1091_v23, %v645_v22 }
 0x244   : > { %v769_v26 = vpop.f32.mrf.mxu1 }
 0x245   : > { %838 = vst [vmem:[#allocation2 + $0x8] sm:$0xff] %v822_v25  ;;  %v820_v28 = vadd.f32 %v769_v26, %v643_v24 }
 0x246   : > { %v1092_v29 = vpop.f32.mrf.mxu1 }
 0x247   : > { %836 = vst [vmem:[#allocation2 + $0x50] sm:$0xff] %v820_v28  ;;  %v823_v31 = vadd.f32 %v1092_v29, %v646_v27 }
 0x248   : > { %v772_v32 = vpop.f32.mrf.mxu1 }
 0x249   : > { %839 = vst [vmem:[#allocation2 + $0x48] sm:$0xff] %v823_v31  ;;  %v821_v33 = vadd.f32 %v772_v32, %v644_v30 }
 0x24b   : > { %837 = vst [vmem:[#allocation2 + $0x68] sm:$0xff] %v821_v33 }
 0x252   : > { %v1095_v35 = vpop.f32.mrf.mxu1 }
 0x253   : > { %v826_v37 = vadd.f32 %v1095_v35, %v649_v34 }
 0x254   : > { %v785_v38 = vpop.f32.mrf.mxu1 }
 0x255   : > { %842 = vst [vmem:[#allocation2 + $0x10] sm:$0xff] %v826_v37  ;;  %v824_v40 = vadd.f32 %v785_v38, %v647_v36 }
 0x256   : > { %v1096_v41 = vpop.f32.mrf.mxu1 }
 0x257   : > { %840 = vst [vmem:[#allocation2 + $0x40] sm:$0xff] %v824_v40  ;;  %v827_v43 = vadd.f32 %v1096_v41, %v650_v39 }
 0x258   : > { %v788_v44 = vpop.f32.mrf.mxu1 }
 0x259   : > { %843 = vst [vmem:[#allocation2 + $0x38] sm:$0xff] %v827_v43  ;;  %v825_v46 = vadd.f32 %v788_v44, %v648_v42 }
 0x25b   : > { %841 = vst [vmem:[#allocation2 + $0x20] sm:$0xff] %v825_v46 }
 0x262   : > { %v1099_v49 = vpop.f32.mrf.mxu1 }
 0x263   : > { %v830_v53 = vadd.f32 %v1099_v49, %v653_v47 }
 0x264   : > { %v801_v45 = vpop.f32.mrf.mxu1 }
 0x265   : > { %846 = vst [vmem:[#allocation2 + $0x78] sm:$0xff] %v830_v53  ;;  %v828_v50 = vadd.f32 %v801_v45, %v651_v52 }
 0x266   : > { %v1100_v54 = vpop.f32.mrf.mxu1 }
 0x267   : > { %844 = vst [vmem:[#allocation2 + $0x60] sm:$0xff] %v828_v50  ;;  %v831_v57 = vadd.f32 %v1100_v54, %v654_v48  ;;  %851 = sbr.rel (%p1046_p2) target bundleno = 629 (0x275), region = 52 }
 0x268   : > { %v804_v60 = vpop.f32.mrf.mxu1 }
 0x269   : > { %847 = vst [vmem:[#allocation2 + $0x28] sm:$0xff] %v831_v57  ;;  %v829_v61 = vadd.f32 %v804_v60, %v652_v55 }
 0x26b   : > { %845 = vst [vmem:[#allocation2 + $0x70] sm:$0xff] %v829_v61 }
 0x26c   : > { %v852_v62 = vld [vmem:[#allocation2 + $0x30] sm:$0xff]  ;;  %v853_v63 = vld [vmem:[#allocation2] sm:$0xff]  ;;  %v854_v51 = vld [vmem:[#allocation2 + $0x58] sm:$0xff] }
 0x26d   : > { %868 = vst [vmem:[#allocation9] sm:$0xff] %v852_v62  ;;  %869 = vst [vmem:[#allocation9 + $0x8] sm:$0xff] %v853_v63  ;;  %v855_v56 = vld [vmem:[#allocation2 + $0x18] sm:$0xff]  ;;  %v856_v58 = vld [vmem:[#allocation2 + $0x50] sm:$0xff] }
 0x26e   : > { %870 = vst [vmem:[#allocation9 + $0x10] sm:$0xff] %v854_v51  ;;  %v857_v1 = vld [vmem:[#allocation2 + $0x68] sm:$0xff]  ;;  %871 = vst [vmem:[#allocation9 + $0x18] sm:$0xff] %v855_v56  ;;  %v860_v6 = vld [vmem:[#allocation2 + $0x40] sm:$0xff] }
 0x26f   : > { %872 = vst [vmem:[#allocation9 + $0x20] sm:$0xff] %v856_v58  ;;  %873 = vst [vmem:[#allocation9 + $0x28] sm:$0xff] %v857_v1  ;;  %v858_v4 = vld [vmem:[#allocation2 + $0x8] sm:$0xff]  ;;  %v861_v59 = vld [vmem:[#allocation2 + $0x20] sm:$0xff] }
 0x270   : > { %v859_v5 = vld [vmem:[#allocation2 + $0x48] sm:$0xff]  ;;  %874 = vst [vmem:[#allocation9 + $0x30] sm:$0xff] %v858_v4  ;;  %876 = vst [vmem:[#allocation9 + $0x40] sm:$0xff] %v860_v6  ;;  %v862_v0 = vld [vmem:[#allocation2 + $0x10] sm:$0xff] }
 0x271   : > { %875 = vst [vmem:[#allocation9 + $0x38] sm:$0xff] %v859_v5  ;;  %v863_v2 = vld [vmem:[#allocation2 + $0x38] sm:$0xff]  ;;  %877 = vst [vmem:[#allocation9 + $0x48] sm:$0xff] %v861_v59  ;;  %v864_v7 = vld [vmem:[#allocation2 + $0x60] sm:$0xff] }
 0x272   : > { %878 = vst [vmem:[#allocation9 + $0x50] sm:$0xff] %v862_v0  ;;  %879 = vst [vmem:[#allocation9 + $0x58] sm:$0xff] %v863_v2  ;;  %v865_v8 = vld [vmem:[#allocation2 + $0x70] sm:$0xff]  ;;  %v866_v9 = vld [vmem:[#allocation2 + $0x78] sm:$0xff] }
 0x273   : > { %880 = vst [vmem:[#allocation9 + $0x60] sm:$0xff] %v864_v7  ;;  %881 = vst [vmem:[#allocation9 + $0x68] sm:$0xff] %v865_v8  ;;  %v867_v11 = vld [vmem:[#allocation2 + $0x28] sm:$0xff] }
 0x274   : > { %882 = vst [vmem:[#allocation9 + $0x70] sm:$0xff] %v866_v9  ;;  %883 = vst [vmem:[#allocation9 + $0x78] sm:$0xff] %v867_v11 }
 0x275 PF: > { %p1127_p5 = scmp.eq.s32.totalorder %s1521_s22, 2  ;;  %s1434_s15 = smov [#allocation9]  }
 0x276   : > { %s893_s23 = sshll.u32 %s1434_s15, 4  ;;  %s894_s23 = int_to_ptr.vmem [resolvable:$true] %s893_s23 }
 0x277   : > { %s1341_s4 = scalar_lea.vmem %s894_s23, 2048  ;;  %p1348_p7 = scmp.lt.s32.totalorder %s894_s23, %s894_s23 }
 0x278   : > { %p1342_p8 = scmp.ne.s32.totalorder %s894_s23, %s1341_s4  ;;  %p1349_p9 = scmp.lt.s32.totalorder %s1341_s4, %s1341_s4 }
 0x27a   : > { %p1343_p10 = pnand %p1342_p8, %p1127_p5  ;;  %p1350_p11 = por %p1349_p9, %p1348_p7 }
 0x27c   : > { %p1344_p4 = pneg %p1343_p10 }
 0x27e   : > { %p1351_p12 = pnand %p1350_p11, %p1344_p4 }
 0x280   : > { %1354 = shalt.err (!%p1351_p12)
}
 0x281   : > { %s1435_s5 = smov 128   ;;  %s1436_s7 = smov 8  }
 0x282   : > { %1110 = dma.vmem_to_hbm [thread:$0]  (%p1127_p5), %s894_s23, 2048, %s1687_s3, [#allocation5], %s1435_s5, %s1435_s5, %s1436_s7  }
 0x283   : > { %1398 = dma.done.wait (%p1127_p5), [#allocation5], 2048  }
 0x284   : > { %1400 = vsyncadd (%p1127_p5), [#allocation5], 4294965248 }
 0x285 PF: > { %s18_s17 = sadd.s32 1, %s1423_s17   ;;  %s1692_s12 = smov %s1407_s13 }
 0x286   : > { %p15_p0 = scmp.ge.s32.totalorder %s18_s17, 5   ;;  %s1693_s13 = smov %s1411_s14 }
 0x287   : > { %s1694_s14 = smov %s1501_s24  ;;  %s1695_s15 = smov %s1419_s16 }
 0x288   : > { %s1696_s16 = smov %s1698_s18  ;;  %17 = sbr.rel (!%p15_p0) target bundleno = 6 (0x6), region = 95 }
 0x28d   :  { %909 = vsyncpa [#allocation4], 1 }
 0x28e   :  { %911 = vsyncpa [#allocation4 + $0x1], 1 }
 0x28f   :  { %912 = vsyncpa [#allocation7], 1 }
 0x290   :  { %914 = vsyncpa [#allocation7 + $0x1], 1 }
 0x291   :  { %915 = vsyncpa [#allocation5], 1 }
 0x292   :  { %917 = vsyncpa [#allocation5 + $0x1], 1 }

</bundles_post_ra>
